<compile_context>
chip_gen: v7x
topology: tpu7x:2x2x1
jax: 0.10.0
libtpu: 0.0.40
codegen_flags: <defaults>
</compile_context>

<pallas_src>
import jax
import jax.numpy as jnp
from jax import lax
from jax.experimental import pallas as pl
from jax.experimental.pallas import tpu as pltpu
from functools import partial


def _round_up(x, m):
    return ((x + m - 1) // m) * m


def _attention_kernel(x_ref, wqkv_ref, bqkv_ref, wo_ref, bo_ref, mask_ref,
                      out_ref, *, num_heads, head_dim):
    H, D = num_heads, head_dim
    E = H * D

    # Fused, scale-folded QKV projection: one lane-dense bf16 MXU matmul with
    # f32 accumulation. wqkv/bqkv are zero-padded to a multiple of 128 lanes.
    qkv = jnp.dot(x_ref[...], wqkv_ref[...],
                  preferred_element_type=jnp.float32) + bqkv_ref[...]   # (N, 128k) f32
    qkv_bf = qkv.astype(jnp.bfloat16)

    # Additive cross-batch mask (built wrapper-side): 0 within a batch
    # element, -1e30 across batch elements.  Batch stays folded on the
    # sublane axis, so one head's attention over the whole batch is a single
    # (N, N) matmul -- no head/batch transposes and fewer, wider MXU pushes.
    neg_mask = mask_ref[...]                                            # (N, N) f32

    dn_qkT = (((1,), (1,)), ((), ()))   # q @ k^T without materializing k^T

    ctx_parts = []
    for h in range(H):                  # static Python unroll over heads
        q_h = qkv_bf[:, h * D:(h + 1) * D]                              # (N, D)
        k_h = qkv_bf[:, E + h * D:E + (h + 1) * D]                      # (N, D)
        v_h = qkv_bf[:, 2 * E + h * D:2 * E + (h + 1) * D]              # (N, D)

        # Scores for every (batch, query, key) of head h in one MXU push;
        # the 1/sqrt(D) scale is already folded into the Q weights.
        s = lax.dot_general(q_h, k_h, dn_qkT,
                            preferred_element_type=jnp.float32) + neg_mask

        # Numerically stable softmax in f32; normalization deferred past PV.
        m = jnp.max(s, axis=-1, keepdims=True)
        e = jnp.exp(s - m)
        l = jnp.sum(e, axis=-1, keepdims=True)

        ctx_h = jnp.dot(e.astype(jnp.bfloat16), v_h,
                        preferred_element_type=jnp.float32)             # (N, D)
        ctx_parts.append(ctx_h * pl.reciprocal(l, approx=False))

    # Heads never leave the lane axis: merge is a lane-axis concat (no
    # sublane/lane relayout), then one output-projection matmul.
    ctx = jnp.concatenate(ctx_parts, axis=-1).astype(jnp.bfloat16)      # (N, E)

    # Output projection into a lane-dense padded slab -> unmasked stores.
    y = jnp.dot(ctx, wo_ref[...],
                preferred_element_type=jnp.float32) + bo_ref[...]
    out_ref[...] = y.astype(out_ref.dtype)


def entity_attention(x, params, num_heads):
    """x: (B, S, E) float32. params: weights (E, E) stored pre-transposed
    (y = x @ W + b) and biases (1, E), matching torch.nn.Linear semantics."""
    B, S, E = x.shape
    assert E % num_heads == 0, "embed_dim must be divisible by num_heads"
    D = E // num_heads
    N = B * S
    LANES = 128

    inv_sqrt_d = 1.0 / float(D) ** 0.5

    # (1) fold the softmax scale into the Q projection (free, wrapper-side).
    w_qkv = jnp.concatenate(
        [params["wq"] * inv_sqrt_d, params["wk"], params["wv"]], axis=1)  # (E, 3E)
    b_qkv = jnp.concatenate(
        [params["bq"] * inv_sqrt_d, params["bk"], params["bv"]], axis=1)  # (1, 3E)

    # (2) zero-pad projection outputs to full 128-lane slabs.
    qkv_cols = _round_up(3 * E, LANES)
    out_cols = _round_up(E, LANES)
    w_qkv = jnp.pad(w_qkv, ((0, 0), (0, qkv_cols - 3 * E)))
    b_qkv = jnp.pad(b_qkv, ((0, 0), (0, qkv_cols - 3 * E)))
    w_o = jnp.pad(params["wo"], ((0, 0), (0, out_cols - E)))
    b_o = jnp.pad(params["bo"], ((0, 0), (0, out_cols - E)))

    # (3) bf16 matmul operands; biases/mask (and all in-kernel softmax) in f32.
    x2 = x.reshape(N, E).astype(jnp.bfloat16)
    w_qkv = w_qkv.astype(jnp.bfloat16)
    w_o = w_o.astype(jnp.bfloat16)

    # Additive cross-batch mask so batch can stay folded on the sublane axis.
    bids = jnp.arange(N, dtype=jnp.int32) // S
    neg_mask = jnp.where(bids[:, None] == bids[None, :], 0.0,
                         -1e30).astype(jnp.float32)

    kernel = partial(_attention_kernel, num_heads=num_heads, head_dim=D)

    vmem = pl.BlockSpec(memory_space=pltpu.MemorySpace.VMEM)
    # Gridless, all-resident: at B*S=16, E=32 per-grid-step pipeline overhead
    # (~0.35us/step) would dominate; everything fits comfortably in VMEM.
    y = pl.pallas_call(
        kernel,
        out_shape=jax.ShapeDtypeStruct((N, out_cols), x.dtype),
        in_specs=[vmem] * 6,
        out_specs=vmem,
    )(x2, w_qkv, b_qkv, w_o, b_o, neg_mask)
    return y[:, :E].reshape(B, S, E)


def entity_attention_ref(x, params, num_heads):
    """Pure-JAX f32 reference matching the PyTorch forward semantics."""
    B, S, E = x.shape
    D = E // num_heads
    q = x @ params["wq"] + params["bq"][0]
    k = x @ params["wk"] + params["bk"][0]
    v = x @ params["wv"] + params["bv"][0]
    q = q.reshape(B, S, num_heads, D).transpose(0, 2, 1, 3)
    k = k.reshape(B, S, num_heads, D).transpose(0, 2, 1, 3)
    v = v.reshape(B, S, num_heads, D).transpose(0, 2, 1, 3)
    scores = jnp.einsum('bhqd,bhkd->bhqk', q, k) / jnp.sqrt(jnp.float32(D))
    attn = jax.nn.softmax(scores, axis=-1)
    ctx = jnp.einsum('bhqk,bhkd->bhqd', attn, v)
    ctx = ctx.transpose(0, 2, 1, 3).reshape(B, S, E)
    return ctx @ params["wo"] + params["bo"][0]


if __name__ == "__main__":
    # Small shapes consistent with the module: batch=2, seq=8, embed_dim=32, heads=4
    B, S, E, H = 2, 8, 32, 4

    key = jax.random.PRNGKey(0)
    keys = jax.random.split(key, 9)

    # Deterministic synthetic parameters.  Weights are stored already
    # transposed (in_features, out_features) so the kernel computes x @ W + b,
    # matching torch.nn.Linear(x) = x @ weight.T + bias.
    scale = 0.1
    params = {
        "wq": scale * jax.random.normal(keys[0], (E, E), jnp.float32),
        "bq": scale * jax.random.normal(keys[1], (1, E), jnp.float32),
        "wk": scale * jax.random.normal(keys[2], (E, E), jnp.float32),
        "bk": scale * jax.random.normal(keys[3], (1, E), jnp.float32),
        "wv": scale * jax.random.normal(keys[4], (E, E), jnp.float32),
        "bv": scale * jax.random.normal(keys[5], (1, E), jnp.float32),
        "wo": scale * jax.random.normal(keys[6], (E, E), jnp.float32),
        "bo": scale * jax.random.normal(keys[7], (1, E), jnp.float32),
    }
    x = jax.random.normal(keys[8], (B, S, E), jnp.float32)

    out = entity_attention(x, params, num_heads=H)
    out = jax.block_until_ready(out)

    ref = entity_attention_ref(x, params, num_heads=H)
    assert out.shape == (B, S, E)
    # bf16 MXU operands (per perf review) -> looser tolerance vs the f32
    # reference; softmax math is all f32 so errors stay at the few-1e-3 level.
    assert jnp.allclose(out, ref, atol=2e-2, rtol=2e-2), "mismatch vs reference"

    print("KERNEL_OK")
</pallas_src>

<mosaic_0001>
module attributes {stable_mosaic.version = 11 : i64} {
  func.func @_attention_kernel(%arg0: memref<16x32xbf16, #tpu.memory_space<vmem>>, %arg1: memref<32x128xbf16, #tpu.memory_space<vmem>>, %arg2: memref<1x128xf32, #tpu.memory_space<vmem>>, %arg3: memref<32x128xbf16, #tpu.memory_space<vmem>>, %arg4: memref<1x128xf32, #tpu.memory_space<vmem>>, %arg5: memref<16x16xf32, #tpu.memory_space<vmem>>, %arg6: memref<16x128xf32, #tpu.memory_space<vmem>>) attributes {dimension_semantics = [], scalar_prefetch = 0 : i64, scratch_operands = 0 : i64, tpu.core_type = #tpu.core_type<tc>} {
    %c0 = arith.constant 0 : index
    %c0_0 = arith.constant 0 : index
    %0 = vector.load %arg0[%c0, %c0_0] : memref<16x32xbf16, #tpu.memory_space<vmem>>, vector<16x32xbf16>
    %c0_1 = arith.constant 0 : index
    %c0_2 = arith.constant 0 : index
    %1 = vector.load %arg1[%c0_1, %c0_2] : memref<32x128xbf16, #tpu.memory_space<vmem>>, vector<32x128xbf16>
    %cst = arith.constant dense<0.000000e+00> : vector<16x128xf32>
    %2 = tpu.matmul %0, %1, %cst {dimension_numbers = #tpu.dot_dimension_numbers<[1], [0], [0], [1], [0, 0, 1, 1], [], []>} : vector<16x32xbf16>, vector<32x128xbf16>, vector<16x128xf32> -> vector<16x128xf32>
    %c0_3 = arith.constant 0 : index
    %c0_4 = arith.constant 0 : index
    %3 = vector.load %arg2[%c0_3, %c0_4] : memref<1x128xf32, #tpu.memory_space<vmem>>, vector<1x128xf32>
    %4 = vector.broadcast %3 : vector<1x128xf32> to vector<16x128xf32>
    %5 = arith.addf %2, %4 : vector<16x128xf32>
    %6 = arith.truncf %5 : vector<16x128xf32> to vector<16x128xbf16>
    %c0_5 = arith.constant 0 : index
    %c0_6 = arith.constant 0 : index
    %7 = vector.load %arg5[%c0_5, %c0_6] : memref<16x16xf32, #tpu.memory_space<vmem>>, vector<16x16xf32>
    %8 = vector.extract_strided_slice %6 {offsets = [0, 0], sizes = [16, 8], strides = [1, 1]} : vector<16x128xbf16> to vector<16x8xbf16>
    %9 = vector.extract_strided_slice %6 {offsets = [0, 32], sizes = [16, 8], strides = [1, 1]} : vector<16x128xbf16> to vector<16x8xbf16>
    %10 = vector.extract_strided_slice %6 {offsets = [0, 64], sizes = [16, 8], strides = [1, 1]} : vector<16x128xbf16> to vector<16x8xbf16>
    %cst_7 = arith.constant dense<0.000000e+00> : vector<16x16xf32>
    %11 = tpu.matmul %8, %9, %cst_7 {dimension_numbers = #tpu.dot_dimension_numbers<[1], [1], [0], [0], [0, 0, 1, 0], [], []>} : vector<16x8xbf16>, vector<16x8xbf16>, vector<16x16xf32> -> vector<16x16xf32>
    %12 = arith.addf %11, %7 : vector<16x16xf32>
    %cst_8 = arith.constant dense<0xFF800000> : vector<16xf32>
    %13 = vector.multi_reduction <maximumf>, %12, %cst_8 [1] : vector<16x16xf32> to vector<16xf32>
    %14 = vector.shape_cast %13 : vector<16xf32> to vector<16x1xf32>
    %15 = vector.broadcast %14 : vector<16x1xf32> to vector<16x16xf32>
    %16 = arith.subf %12, %15 : vector<16x16xf32>
    %17 = math.exp %16 : vector<16x16xf32>
    %cst_9 = arith.constant dense<0.000000e+00> : vector<16xf32>
    %18 = vector.multi_reduction <add>, %17, %cst_9 [1] : vector<16x16xf32> to vector<16xf32>
    %19 = vector.shape_cast %18 : vector<16xf32> to vector<16x1xf32>
    %20 = arith.truncf %17 : vector<16x16xf32> to vector<16x16xbf16>
    %cst_10 = arith.constant dense<0.000000e+00> : vector<16x8xf32>
    %21 = tpu.matmul %20, %10, %cst_10 {dimension_numbers = #tpu.dot_dimension_numbers<[1], [0], [0], [1], [0, 0, 1, 1], [], []>} : vector<16x16xbf16>, vector<16x8xbf16>, vector<16x8xf32> -> vector<16x8xf32>
    %22 = tpu.reciprocal %19 : vector<16x1xf32> -> vector<16x1xf32>
    %23 = vector.broadcast %22 : vector<16x1xf32> to vector<16x8xf32>
    %24 = arith.mulf %21, %23 : vector<16x8xf32>
    %25 = vector.extract_strided_slice %6 {offsets = [0, 8], sizes = [16, 8], strides = [1, 1]} : vector<16x128xbf16> to vector<16x8xbf16>
    %26 = vector.extract_strided_slice %6 {offsets = [0, 40], sizes = [16, 8], strides = [1, 1]} : vector<16x128xbf16> to vector<16x8xbf16>
    %27 = vector.extract_strided_slice %6 {offsets = [0, 72], sizes = [16, 8], strides = [1, 1]} : vector<16x128xbf16> to vector<16x8xbf16>
    %cst_11 = arith.constant dense<0.000000e+00> : vector<16x16xf32>
    %28 = tpu.matmul %25, %26, %cst_11 {dimension_numbers = #tpu.dot_dimension_numbers<[1], [1], [0], [0], [0, 0, 1, 0], [], []>} : vector<16x8xbf16>, vector<16x8xbf16>, vector<16x16xf32> -> vector<16x16xf32>
    %29 = arith.addf %28, %7 : vector<16x16xf32>
    %cst_12 = arith.constant dense<0xFF800000> : vector<16xf32>
    %30 = vector.multi_reduction <maximumf>, %29, %cst_12 [1] : vector<16x16xf32> to vector<16xf32>
    %31 = vector.shape_cast %30 : vector<16xf32> to vector<16x1xf32>
    %32 = vector.broadcast %31 : vector<16x1xf32> to vector<16x16xf32>
    %33 = arith.subf %29, %32 : vector<16x16xf32>
    %34 = math.exp %33 : vector<16x16xf32>
    %cst_13 = arith.constant dense<0.000000e+00> : vector<16xf32>
    %35 = vector.multi_reduction <add>, %34, %cst_13 [1] : vector<16x16xf32> to vector<16xf32>
    %36 = vector.shape_cast %35 : vector<16xf32> to vector<16x1xf32>
    %37 = arith.truncf %34 : vector<16x16xf32> to vector<16x16xbf16>
    %cst_14 = arith.constant dense<0.000000e+00> : vector<16x8xf32>
    %38 = tpu.matmul %37, %27, %cst_14 {dimension_numbers = #tpu.dot_dimension_numbers<[1], [0], [0], [1], [0, 0, 1, 1], [], []>} : vector<16x16xbf16>, vector<16x8xbf16>, vector<16x8xf32> -> vector<16x8xf32>
    %39 = tpu.reciprocal %36 : vector<16x1xf32> -> vector<16x1xf32>
    %40 = vector.broadcast %39 : vector<16x1xf32> to vector<16x8xf32>
    %41 = arith.mulf %38, %40 : vector<16x8xf32>
    %42 = vector.extract_strided_slice %6 {offsets = [0, 16], sizes = [16, 8], strides = [1, 1]} : vector<16x128xbf16> to vector<16x8xbf16>
    %43 = vector.extract_strided_slice %6 {offsets = [0, 48], sizes = [16, 8], strides = [1, 1]} : vector<16x128xbf16> to vector<16x8xbf16>
    %44 = vector.extract_strided_slice %6 {offsets = [0, 80], sizes = [16, 8], strides = [1, 1]} : vector<16x128xbf16> to vector<16x8xbf16>
    %cst_15 = arith.constant dense<0.000000e+00> : vector<16x16xf32>
    %45 = tpu.matmul %42, %43, %cst_15 {dimension_numbers = #tpu.dot_dimension_numbers<[1], [1], [0], [0], [0, 0, 1, 0], [], []>} : vector<16x8xbf16>, vector<16x8xbf16>, vector<16x16xf32> -> vector<16x16xf32>
    %46 = arith.addf %45, %7 : vector<16x16xf32>
    %cst_16 = arith.constant dense<0xFF800000> : vector<16xf32>
    %47 = vector.multi_reduction <maximumf>, %46, %cst_16 [1] : vector<16x16xf32> to vector<16xf32>
    %48 = vector.shape_cast %47 : vector<16xf32> to vector<16x1xf32>
    %49 = vector.broadcast %48 : vector<16x1xf32> to vector<16x16xf32>
    %50 = arith.subf %46, %49 : vector<16x16xf32>
    %51 = math.exp %50 : vector<16x16xf32>
    %cst_17 = arith.constant dense<0.000000e+00> : vector<16xf32>
    %52 = vector.multi_reduction <add>, %51, %cst_17 [1] : vector<16x16xf32> to vector<16xf32>
    %53 = vector.shape_cast %52 : vector<16xf32> to vector<16x1xf32>
    %54 = arith.truncf %51 : vector<16x16xf32> to vector<16x16xbf16>
    %cst_18 = arith.constant dense<0.000000e+00> : vector<16x8xf32>
    %55 = tpu.matmul %54, %44, %cst_18 {dimension_numbers = #tpu.dot_dimension_numbers<[1], [0], [0], [1], [0, 0, 1, 1], [], []>} : vector<16x16xbf16>, vector<16x8xbf16>, vector<16x8xf32> -> vector<16x8xf32>
    %56 = tpu.reciprocal %53 : vector<16x1xf32> -> vector<16x1xf32>
    %57 = vector.broadcast %56 : vector<16x1xf32> to vector<16x8xf32>
    %58 = arith.mulf %55, %57 : vector<16x8xf32>
    %59 = vector.extract_strided_slice %6 {offsets = [0, 24], sizes = [16, 8], strides = [1, 1]} : vector<16x128xbf16> to vector<16x8xbf16>
    %60 = vector.extract_strided_slice %6 {offsets = [0, 56], sizes = [16, 8], strides = [1, 1]} : vector<16x128xbf16> to vector<16x8xbf16>
    %61 = vector.extract_strided_slice %6 {offsets = [0, 88], sizes = [16, 8], strides = [1, 1]} : vector<16x128xbf16> to vector<16x8xbf16>
    %cst_19 = arith.constant dense<0.000000e+00> : vector<16x16xf32>
    %62 = tpu.matmul %59, %60, %cst_19 {dimension_numbers = #tpu.dot_dimension_numbers<[1], [1], [0], [0], [0, 0, 1, 0], [], []>} : vector<16x8xbf16>, vector<16x8xbf16>, vector<16x16xf32> -> vector<16x16xf32>
    %63 = arith.addf %62, %7 : vector<16x16xf32>
    %cst_20 = arith.constant dense<0xFF800000> : vector<16xf32>
    %64 = vector.multi_reduction <maximumf>, %63, %cst_20 [1] : vector<16x16xf32> to vector<16xf32>
    %65 = vector.shape_cast %64 : vector<16xf32> to vector<16x1xf32>
    %66 = vector.broadcast %65 : vector<16x1xf32> to vector<16x16xf32>
    %67 = arith.subf %63, %66 : vector<16x16xf32>
    %68 = math.exp %67 : vector<16x16xf32>
    %cst_21 = arith.constant dense<0.000000e+00> : vector<16xf32>
    %69 = vector.multi_reduction <add>, %68, %cst_21 [1] : vector<16x16xf32> to vector<16xf32>
    %70 = vector.shape_cast %69 : vector<16xf32> to vector<16x1xf32>
    %71 = arith.truncf %68 : vector<16x16xf32> to vector<16x16xbf16>
    %cst_22 = arith.constant dense<0.000000e+00> : vector<16x8xf32>
    %72 = tpu.matmul %71, %61, %cst_22 {dimension_numbers = #tpu.dot_dimension_numbers<[1], [0], [0], [1], [0, 0, 1, 1], [], []>} : vector<16x16xbf16>, vector<16x8xbf16>, vector<16x8xf32> -> vector<16x8xf32>
    %73 = tpu.reciprocal %70 : vector<16x1xf32> -> vector<16x1xf32>
    %74 = vector.broadcast %73 : vector<16x1xf32> to vector<16x8xf32>
    %75 = arith.mulf %72, %74 : vector<16x8xf32>
    %76 = tpu.concatenate %24, %41, %58, %75 in 1 : vector<16x8xf32>, vector<16x8xf32>, vector<16x8xf32>, vector<16x8xf32> -> vector<16x32xf32>
    %77 = arith.truncf %76 : vector<16x32xf32> to vector<16x32xbf16>
    %c0_23 = arith.constant 0 : index
    %c0_24 = arith.constant 0 : index
    %78 = vector.load %arg3[%c0_23, %c0_24] : memref<32x128xbf16, #tpu.memory_space<vmem>>, vector<32x128xbf16>
    %cst_25 = arith.constant dense<0.000000e+00> : vector<16x128xf32>
    %79 = tpu.matmul %77, %78, %cst_25 {dimension_numbers = #tpu.dot_dimension_numbers<[1], [0], [0], [1], [0, 0, 1, 1], [], []>} : vector<16x32xbf16>, vector<32x128xbf16>, vector<16x128xf32> -> vector<16x128xf32>
    %c0_26 = arith.constant 0 : index
    %c0_27 = arith.constant 0 : index
    %80 = vector.load %arg4[%c0_26, %c0_27] : memref<1x128xf32, #tpu.memory_space<vmem>>, vector<1x128xf32>
    %81 = vector.broadcast %80 : vector<1x128xf32> to vector<16x128xf32>
    %82 = arith.addf %79, %81 : vector<16x128xf32>
    %c0_28 = arith.constant 0 : index
    %c0_29 = arith.constant 0 : index
    %83 = vector.load %arg6[%c0_28, %c0_29] : memref<16x128xf32, #tpu.memory_space<vmem>>, vector<16x128xf32>
    tpu.vector_store %arg6[%c0_28, %c0_29], %82 {strides = array<i32>} : memref<16x128xf32, #tpu.memory_space<vmem>>, vector<16x128xf32>,
    return
  }
}

</mosaic_0001>

<bundles_post_ra>
// kernel: tpu_custom_call.1
= control target key start
LH: loop header
LB: loop body
LE: loop exit
PB: predicated region body
PF: predicated region fallthrough
CT: control target
= control target key end

     0   :  { %11 = vsyncpa [#allocation3], 0  ;;  %s1243_s0 = inlined_call_operand.hbm [shape: bf16[16,32], index: 0, kind: input, shape index: {}]   ;;  %s1244_s1 = inlined_call_operand.hbm [shape: bf16[32,128], index: 1, kind: input, shape index: {}]   ;;  %s1245_s2 = inlined_call_operand.vmem [shape: f32[1,128], index: 2, kind: input, shape index: {}]   ;;  %s1246_s3 = inlined_call_operand.hbm [shape: bf16[32,128], index: 3, kind: input, shape index: {}]   ;;  %s1247_s4 = inlined_call_operand.vmem [shape: f32[1,128], index: 4, kind: input, shape index: {}]   ;;  %s1248_s5 = inlined_call_operand.vmem [shape: f32[16,16], index: 5, kind: input, shape index: {}]   ;;  %s1249_s6 = inlined_call_operand.hbm [shape: f32[16,128], index: 6, kind: output, shape index: {}]  }
   0x1   :  { %12 = vsyncpa [#allocation6], 0 }
   0x2   :  { %13 = vsyncpa [#allocation4], 0  ;;  %s1019_s21 = smov [#allocation5]   ;;  %s1020_s23 = smov [#allocation2]  }
   0x3   :  { %s31_s22 = sshll.u32 %s1019_s21, 4  ;;  %s19_s24 = sshll.u32 %s1020_s23, 4  ;;  %s32_s22 = int_to_ptr.vmem [resolvable:$true] %s31_s22  ;;  %s1076_s24 = int_to_ptr.vmem [resolvable:$true] %s19_s24 }
   0x4   :  { %s925_s27 = scalar_lea.hbm %s1244_s1, 256 }
   0x5   :  { %p926_p0 = scmp.ne.s32.totalorder %s1244_s1, %s925_s27  ;;  %p929_p1 = scmp.lt.u32.totalorder %s925_s27, %s1244_s1 }
   0x7   :  { %p931_p2 = pnand %p929_p1, %p926_p0 }
   0x9   :  { %934 = shalt.err (!%p931_p2)
}
   0xa   :  { %s935_s8 = scalar_lea.vmem %s32_s22, 256  ;;  %p940_p4 = scmp.lt.s32.totalorder %s32_s22, %s32_s22 }
   0xb   :  { %p936_p3 = scmp.ne.s32.totalorder %s32_s22, %s935_s8  ;;  %p941_p5 = scmp.lt.s32.totalorder %s935_s8, %s935_s8 }
   0xd   :  { %p942_p6 = por %p941_p5, %p940_p4 }
   0xf   :  { %p943_p7 = pnand %p942_p6, %p936_p3 }
  0x11   :  { %946 = shalt.err (!%p943_p7)
}
  0x12   :  { %s1021_s9 = smov 64   ;;  %s1022_s10 = smov 4  }
  0x13   :  { %37 = dma.hbm_to_vmem [thread:$0]  %s1244_s1, 256, %s32_s22, [#allocation6], %s1021_s9, %s1021_s9, %s1022_s10  }
  0x14   :  { %s947_s15 = scalar_lea.hbm %s1243_s0, 128 }
  0x15   :  { %p948_p8 = scmp.ne.s32.totalorder %s1243_s0, %s947_s15  ;;  %p951_p9 = scmp.lt.u32.totalorder %s947_s15, %s1243_s0 }
  0x17   :  { %p953_p10 = pnand %p951_p9, %p948_p8 }
  0x19   :  { %956 = shalt.err (!%p953_p10)
}
  0x1a   :  { %s957_s20 = scalar_lea.vmem %s1076_s24, 128  ;;  %p962_p12 = scmp.lt.s32.totalorder %s1076_s24, %s1076_s24 }
  0x1b   :  { %p958_p11 = scmp.ne.s32.totalorder %s1076_s24, %s957_s20  ;;  %p963_p13 = scmp.lt.s32.totalorder %s957_s20, %s957_s20 }
  0x1d   :  { %p964_p0 = por %p963_p13, %p962_p12 }
  0x1f   :  { %p965_p1 = pnand %p964_p0, %p958_p11 }
  0x21   :  { %968 = shalt.err (!%p965_p1)
}
  0x22   :  { %25 = dma.hbm_to_vmem [thread:$0]  %s1243_s0, 128, %s1076_s24, [#allocation3], %s1021_s9, %s1021_s9, %s1022_s10  }
  0x23   :  { %s1023_s22 = smov [#allocation7]   ;;  %s969_s27 = scalar_lea.hbm %s1246_s3, 256 }
  0x24   :  { %s45_s23 = sshll.u32 %s1023_s22, 4  ;;  %p970_p2 = scmp.ne.s32.totalorder %s1246_s3, %s969_s27  ;;  %s46_s23 = int_to_ptr.vmem [resolvable:$true] %s45_s23 }
  0x25   :  { %p973_p3 = scmp.lt.u32.totalorder %s969_s27, %s1246_s3 }
  0x27   :  { %p975_p4 = pnand %p973_p3, %p970_p2 }
  0x29   :  { %978 = shalt.err (!%p975_p4)
}
  0x2a   :  { %s979_s8 = scalar_lea.vmem %s46_s23, 256  ;;  %p984_p6 = scmp.lt.s32.totalorder %s46_s23, %s46_s23 }
  0x2b   :  { %p980_p5 = scmp.ne.s32.totalorder %s46_s23, %s979_s8  ;;  %p985_p7 = scmp.lt.s32.totalorder %s979_s8, %s979_s8 }
  0x2d   :  { %p986_p8 = por %p985_p7, %p984_p6 }
  0x2f   :  { %p987_p9 = pnand %p986_p8, %p980_p5 }
  0x31   :  { %990 = shalt.err (!%p987_p9)
}
  0x32   :  { %51 = dma.hbm_to_vmem [thread:$0]  %s1246_s3, 256, %s46_s23, [#allocation6], %s1021_s9, %s1021_s9, %s1022_s10  }
  0x33   :  { %1013 = dma.done.wait [#allocation3], 128  }
  0x34   :  { %1014 = vsyncadd [#allocation3], 4294967168 }
  0x35   :  { %1015 = dma.done.wait [#allocation6], 512  }
  0x36   :  { %1016 = vsyncadd [#allocation6], 4294966784  ;;  %v1024_v0 = vmov 0.0   ;;  %vm1025_vm0 = vmmov 0   ;;  %v888_v1 = vld [vmem:[#allocation5] sm:$0xff]   ;;  %v889_v2 = vld [vmem:[#allocation5 + $0x8] sm:$0xff]  }
  0x37   :  { %787 = vmatprep.subr.bf16.mxu0 %v1024_v0  ;;  %791 = vmatprep.mubr.msk.bf16.mxu0 %vm1025_vm0, %v1024_v0  ;;  %v890_v3 = vld [vmem:[#allocation2] sm:$0xff]   ;;  %vm96_vm1 = vcmask 261120   ;;  %v748_v4 = vld [vmem:[%s1245_s2] ss:$0 sm:$0xff]  ;;  %s1026_s11 = smov 120   ;;  %s1027_s12 = smov 96  }
  0x38   :  { %795 = vmatprep.subr.bf16.mxu1 %v1024_v0  ;;  %797 = vmatprep.mubr.msk.bf16.mxu1 %vm1025_vm0, %v1024_v0  ;;  %s1028_s13 = smov 80   ;;  %s1029_s14 = smov 88   ;;  %vm147_vm2 = vcmask 64512   ;;  %v142_v23 = vld [vmem:[%s1248_s5] sm:$0xff]  ;;  %v143_v25 = vld [vmem:[%s1248_s5 + $0x8] sm:$0xff]  ;;  %vm195_vm3 = vcmask 130048  }
  0x39   :  { %788 = vmatpush3.bf16.msra.mxu0 %v888_v1  ;;  %s1030_s2 = smov 72   ;;  %s1031_s15 = smov 112   ;;  %vm657_vm4 = vcmask 195584  }
  0x3a   :  { %789 = vmatprep.subr.bf16.mxu0 %v1024_v0  ;;  %s1032_s16 = smov 104   ;;  %s1033_s5 = smov 56  }
  0x3b   :  { %s1034_s1 = smov 48   ;;  %s1035_s21 = smov 40  }
  0x3c   :  { %s1037_s22 = smov 16   ;;  %s1038_s23 = smov 24  }
  0x3d   :  { %790 = vmatpush3.bf16.msra.mxu0 %v889_v2  ;;  %s1039_s27 = smov [#allocation8]  }
  0x3e   :  { %801 = vmatprep.subr.bf16.mxu0 %v1024_v0  ;;  %s735_s28 = sshll.u32 %s1039_s27, 4  ;;  %s736_s28 = int_to_ptr.vmem [resolvable:$true] %s735_s28 }
  0x3f   :  { %s991_s29 = scalar_lea.vmem %s736_s28, 256  ;;  %p996_p11 = scmp.lt.s32.totalorder %s736_s28, %s736_s28 }
  0x40   :  { %792 = vmatmul.mubr.msk.bf16.vlgmr.msra.gmra.mrb[0].mxu0 %vm96_vm1, %v890_v3  ;;  %p992_p10 = scmp.ne.s32.totalorder %s736_s28, %s991_s29  ;;  %p997_p12 = scmp.lt.s32.totalorder %s991_s29, %s991_s29 }
  0x41   :  { %803 = vmatprep.mubr.msk.bf16.mxu0 %vm1025_vm0, %v1024_v0 }
  0x42   :  { %p998_p13 = por %p997_p12, %p996_p11 }
  0x44   :  { %p999_p0 = pnand %p998_p13, %p992_p10 }
 0x113   :  { %v134_v5 = vpop.f32.mrb[0].mxu0 }
 0x114   :  { %v793_v6 = vpop.f32.mrb[1].mxu0  ;;  %v135_v8 = vadd.f32 %v748_v4, %v134_v5 }
 0x115   :  { %v137_v7 = vpop.f32.mrb[2].mxu0 }
 0x116   :  { %v138_v9 = vadd.f32 %v748_v4, %v137_v7  ;;  %v794_v10 = vpop.f32.mrb[3].mxu0 }
 0x118   :  { %v1142_v11 = vpack.c.bf16 %v138_v9, %v135_v8 }
 0x11a   :  { %266 = vrot.lane.b32.xlu1 %v1142_v11, %s1026_s11  ;;  %145 = vrot.lane.b32.xlu0 %v1142_v11, %s1027_s12 }
 0x11e   :  { %389 = vrot.lane.b32.xlu1 %v1142_v11, %s1028_s13  ;;  %268 = vrot.lane.b32.xlu0 %v1142_v11, %s1029_s14 }
 0x122   :  { %510 = vrot.lane.b32.xlu1 %v1142_v11, %s1030_s2  ;;  %387 = vrot.lane.b32.xlu0 %v1142_v11, %s1031_s15 }
 0x126   :  { %508 = vrot.lane.b32.xlu0 %v1142_v11, %s1032_s16 }
 0x18c   :  { %v146_v12 = vpop.permute.xlu0 %145  ;;  %v267_v15 = vpop.permute.xlu1 %266 }
 0x18d   :  { %v152_v13 = vsel %vm147_vm2, %v146_v12, 0 }
 0x18e   :  { %796 = vmatpush3.bf16.xpose.msra.mxu1 %v152_v13 }
 0x18f   :  { %807 = vmatprep.subr.bf16.mxu1 %v1024_v0 }
 0x190   :  { %v269_v14 = vpop.permute.xlu0 %268  ;;  %v390_v17 = vpop.permute.xlu1 %389 }
 0x191   :  { %v274_v16 = vsel %vm147_vm2, %v269_v14, 0  ;;  %v395_v18 = vsel %vm147_vm2, %v390_v17, 0 }
 0x194   :  { %v511_v19 = vpop.permute.xlu1 %510  ;;  %v388_v20 = vpop.permute.xlu0 %387 }
 0x195   :  { %798 = vmatmul.mubr.msk.bf16.vlgmr.msra.gmra.mrb[0].mxu1 %vm147_vm2, %v1142_v11  ;;  %v516_v21 = vsel %vm147_vm2, %v511_v19, 0 }
 0x196   :  { %808 = vmatpush3.bf16.xpose.msra.mxu1 %v274_v16  ;;  %809 = vmatprep.mubr.msk.bf16.mxu1 %vm1025_vm0, %v1024_v0 }
 0x197   :  { %819 = vmatprep.subr.bf16.mxu1 %v1024_v0 }
 0x198   :  { %v509_v22 = vpop.permute.xlu0 %508 }
 0x19d   :  { %810 = vmatmul.mubr.msk.bf16.vlgmr.msra.gmra.mrb[4].mxu1 %vm147_vm2, %v267_v15 }
 0x19e   :  { %820 = vmatpush3.bf16.xpose.msra.mxu1 %v395_v18  ;;  %821 = vmatprep.mubr.msk.bf16.mxu1 %vm1025_vm0, %v1024_v0 }
 0x19f   :  { %831 = vmatprep.subr.bf16.mxu1 %v1024_v0 }
 0x1a5   :  { %822 = vmatmul.mubr.msk.bf16.vlgmr.msra.gmra.mrb[8].mxu1 %vm147_vm2, %v388_v20 }
 0x1a6   :  { %832 = vmatpush3.bf16.xpose.msra.mxu1 %v516_v21  ;;  %833 = vmatprep.mubr.msk.bf16.mxu1 %vm1025_vm0, %v1024_v0 }
 0x1a7   :  { %843 = vmatprep.subr.bf16.mxu1 %v1024_v0 }
 0x1ad   :  { %834 = vmatmul.mubr.msk.bf16.vlgmr.msra.gmra.mrb[12].mxu1 %vm147_vm2, %v509_v22 }
 0x1ae   :  { %847 = vmatprep.mubr.msk.bf16.mxu1 %vm1025_vm0, %v1024_v0 }
 0x268   :  { %v188_v24 = vpop.f32.mrb[0].mxu1 }
 0x269   :  { %v189_v26 = vadd.f32 %v188_v24, %v142_v23  ;;  %v799_v27 = vpop.f32.mrb[1].mxu1 }
 0x26a   :  { %v191_v28 = vpop.f32.mrb[2].mxu1 }
 0x26b   :  { %v192_v29 = vadd.f32 %v191_v28, %v143_v25  ;;  %v800_v30 = vpop.f32.mrb[3].mxu1  ;;  %v196_v31 = vsel %vm195_vm3, %v189_v26, -inf }
 0x26c   :  { %197 = vmax.xlane.f32.xlu1 %v196_v31 }
 0x26d   :  { %v199_v32 = vsel %vm195_vm3, %v192_v29, -inf }
 0x26e   :  { %200 = vmax.xlane.f32.xlu0 %v199_v32 }
 0x270   :  { %v310_v33 = vpop.f32.mrb[4].mxu1 }
 0x271   :  { %v311_v34 = vadd.f32 %v310_v33, %v142_v23  ;;  %v811_v35 = vpop.f32.mrb[5].mxu1 }
 0x272   :  { %v313_v36 = vpop.f32.mrb[6].mxu1 }
 0x273   :  { %v314_v37 = vadd.f32 %v313_v36, %v143_v25  ;;  %v812_v38 = vpop.f32.mrb[7].mxu1  ;;  %v317_v39 = vsel %vm195_vm3, %v311_v34, -inf }
 0x274   :  { %318 = vmax.xlane.f32.xlu0 %v317_v39 }
 0x275   :  { %v320_v40 = vsel %vm195_vm3, %v314_v37, -inf }
 0x276   :  { %321 = vmax.xlane.f32.xlu1 %v320_v40 }
 0x278   :  { %v431_v41 = vpop.f32.mrb[8].mxu1 }
 0x279   :  { %v432_v42 = vadd.f32 %v431_v41, %v142_v23  ;;  %v823_v43 = vpop.f32.mrb[9].mxu1 }
 0x27a   :  { %v434_v44 = vpop.f32.mrb[10].mxu1 }
 0x27b   :  { %v824_v45 = vpop.f32.mrb[11].mxu1  ;;  %v438_v46 = vsel %vm195_vm3, %v432_v42, -inf  ;;  %v435_v53 = vadd.f32 %v434_v44, %v143_v25 }
 0x27c   :  { %439 = vmax.xlane.f32.xlu0 %v438_v46 }
 0x27d   :  { %v441_v54 = vsel %vm195_vm3, %v435_v53, -inf }
 0x280   :  { %v552_v47 = vpop.f32.mrb[12].mxu1 }
 0x281   :  { %v1183_v48 = vadd.f32 %v552_v47, %v142_v23  ;;  %v835_v49 = vpop.f32.mrb[13].mxu1 }
 0x282   :  { %v555_v50 = vpop.f32.mrb[14].mxu1 }
 0x283   :  { %v1185_v51 = vadd.f32 %v555_v50, %v143_v25  ;;  %v836_v52 = vpop.f32.mrb[15].mxu1  ;;  %v559_v56 = vsel %vm195_vm3, %v1183_v48, -inf }
 0x285   :  { %v562_v55 = vsel %vm195_vm3, %v1185_v51, -inf }
 0x287   :  { %336 = vrot.lane.b32.xlu1 %v1142_v11, %s1033_s5 }
 0x292   :  { %215 = vrot.lane.b32.xlu0 %v1142_v11, %s1021_s9  ;;  %s1036_s9 = smov 8  }
 0x2ab   :  { %442 = vmax.xlane.f32.xlu1 %v441_v54 }
 0x2af   :  { %563 = vmax.xlane.f32.xlu1 %v562_v55 }
 0x2b1   :  { %560 = vmax.xlane.f32.xlu0 %v559_v56 }
 0x2c0   :  { %457 = vrot.lane.b32.xlu1 %v1142_v11, %s1034_s1 }
 0x2c7   :  { %578 = vrot.lane.b32.xlu0 %v1142_v11, %s1035_s21 }
 0x2f9   :  { %v198_v57 = vpop.xlane.xlu1 %197 }
 0x2fa   :  { %v202_v59 = vsub.f32 %v189_v26, %v198_v57 }
 0x2fb   :  { %v201_v58 = vpop.xlane.xlu0 %200 }
 0x2fc   :  { %v203_v60 = vsub.f32 %v192_v29, %v201_v58  ;;  %v204_v62 = vmul.f32 1.442695, %v202_v59 }
 0x2fe   :  { %v206_v61 = vmul.f32 1.442695, %v203_v60  ;;  %v891_v60 = vld [vmem:[#allocation7] sm:$0xff]  }
 0x2ff   :  { %844 = vmatpush3.bf16.msra.mxu1 %v891_v60 }
 0x300   :  { %893 = vpow2.f32 %v206_v61  ;;  %845 = vmatprep.subr.bf16.mxu1 %v1024_v0 }
 0x301   :  { %v319_v63 = vpop.xlane.xlu0 %318  ;;  %895 = vpow2.f32 %v204_v62 }
 0x302   :  { %v323_v1 = vsub.f32 %v311_v34, %v319_v63 }
 0x303   :  { %v322_v2 = vpop.xlane.xlu1 %321 }
 0x304   :  { %v325_v3 = vmul.f32 1.442695, %v323_v1  ;;  %v324_v4 = vsub.f32 %v314_v37, %v322_v2 }
 0x306   :  { %897 = vpow2.f32 %v325_v3  ;;  %v327_v5 = vmul.f32 1.442695, %v324_v4 }
 0x307   :  { %v337_v14 = vpop.permute.xlu1 %336 }
 0x308   :  { %899 = vpow2.f32 %v327_v5 }
 0x309   :  { %v440_v6 = vpop.xlane.xlu0 %439 }
 0x30a   :  { %v444_v7 = vsub.f32 %v432_v42, %v440_v6  ;;  %v894_v8 = vpop.eup %893 }
 0x30b   :  { %v896_v11 = vpop.eup %895  ;;  %v211_v39 = vsel %vm195_vm3, %v894_v8, 0.0 }
 0x30c   :  { %v446_v9 = vmul.f32 1.442695, %v444_v7  ;;  %v214_v12 = vpack.c.bf16 %v894_v8, %v896_v11  ;;  %v208_v41 = vsel %vm195_vm3, %v896_v11, 0.0  ;;  %v892_v7 = vld [vmem:[#allocation7 + $0x8] sm:$0xff]  }
 0x30d   :  { %v216_v10 = vpop.permute.xlu0 %215  ;;  %846 = vmatpush3.bf16.msra.mxu1 %v892_v7 }
 0x30e   :  { %901 = vpow2.f32 %v446_v9  ;;  %802 = vmatpush3.bf16.msra.mxu0 %v216_v10 }
 0x30f   :  { %813 = vmatprep.subr.bf16.mxu0 %v1024_v0 }
 0x310   :  { %v898_v13 = vpop.eup %897 }
 0x311   :  { %804 = vmatmul.mubr.msk.bf16.vlgmr.msra.gmra.mrb[4].mxu0 %vm195_vm3, %v214_v12  ;;  %v329_v15 = vsel %vm195_vm3, %v898_v13, 0.0 }
 0x312   :  { %v900_v16 = vpop.eup %899  ;;  %330 = vadd.xlane.f32.xlu1 %v329_v15  ;;  %814 = vmatpush3.bf16.msra.mxu0 %v337_v14 }
 0x313   :  { %v332_v17 = vsel %vm195_vm3, %v900_v16, 0.0  ;;  %815 = vmatprep.mubr.msk.bf16.mxu0 %vm1025_vm0, %v1024_v0  ;;  %825 = vmatprep.subr.bf16.mxu0 %v1024_v0  ;;  %v335_v18 = vpack.c.bf16 %v900_v16, %v898_v13 }
 0x314   :  { %333 = vadd.xlane.f32.xlu0 %v332_v17 }
 0x318   :  { %v902_v19 = vpop.eup %901 }
 0x319   :  { %816 = vmatmul.mubr.msk.bf16.vlgmr.msra.gmra.mrb[8].mxu0 %vm195_vm3, %v335_v18  ;;  %v450_v20 = vsel %vm195_vm3, %v902_v19, 0.0 }
 0x31a   :  { %451 = vadd.xlane.f32.xlu0 %v450_v20  ;;  %827 = vmatprep.mubr.msk.bf16.mxu0 %vm1025_vm0, %v1024_v0 }
 0x338   :  { %v443_v21 = vpop.xlane.xlu1 %442 }
 0x339   :  { %v445_v22 = vsub.f32 %v435_v53, %v443_v21 }
 0x33b   :  { %v448_v23 = vmul.f32 1.442695, %v445_v22 }
 0x33c   :  { %v564_v24 = vpop.xlane.xlu1 %563 }
 0x33d   :  { %903 = vpow2.f32 %v448_v23  ;;  %v566_v25 = vsub.f32 %v1185_v51, %v564_v24 }
 0x33e   :  { %v561_v26 = vpop.xlane.xlu0 %560 }
 0x33f   :  { %v569_v27 = vmul.f32 1.442695, %v566_v25  ;;  %v565_v28 = vsub.f32 %v1183_v48, %v561_v26 }
 0x340   :  { %v458_v29 = vpop.permute.xlu1 %457 }
 0x341   :  { %905 = vpow2.f32 %v569_v27  ;;  %v567_v30 = vmul.f32 1.442695, %v565_v28  ;;  %826 = vmatpush3.bf16.msra.mxu0 %v458_v29 }
 0x342   :  { %837 = vmatprep.subr.bf16.mxu0 %v1024_v0  ;;  %v579_v34 = vpop.permute.xlu0 %578 }
 0x343   :  { %907 = vpow2.f32 %v567_v30 }
 0x347   :  { %v904_v31 = vpop.eup %903 }
 0x348   :  { %v453_v32 = vsel %vm195_vm3, %v904_v31, 0.0  ;;  %v456_v33 = vpack.c.bf16 %v904_v31, %v902_v19 }
 0x349   :  { %454 = vadd.xlane.f32.xlu1 %v453_v32 }
 0x34a   :  { %828 = vmatmul.mubr.msk.bf16.vlgmr.msra.gmra.mrb[12].mxu0 %vm195_vm3, %v456_v33 }
 0x34b   :  { %v906_v35 = vpop.eup %905  ;;  %838 = vmatpush3.bf16.msra.mxu0 %v579_v34  ;;  %839 = vmatprep.mubr.msk.bf16.mxu0 %vm1025_vm0, %v1024_v0 }
 0x34c   :  { %v574_v36 = vsel %vm195_vm3, %v906_v35, 0.0 }
 0x34d   :  { %v908_v37 = vpop.eup %907  ;;  %575 = vadd.xlane.f32.xlu1 %v574_v36 }
 0x34e   :  { %v571_v38 = vsel %vm195_vm3, %v908_v37, 0.0  ;;  %v577_v40 = vpack.c.bf16 %v906_v35, %v908_v37 }
 0x34f   :  { %572 = vadd.xlane.f32.xlu0 %v571_v38 }
 0x351   :  { %212 = vadd.xlane.f32.xlu1 %v211_v39  ;;  %v761_v39 = vld [vmem:[%s1247_s4] ss:$0 sm:$0xff] }
 0x352   :  { %840 = vmatmul.mubr.msk.bf16.vlgmr.msra.gmra.mrb[16].mxu0 %vm195_vm3, %v577_v40 }
 0x353   :  { %209 = vadd.xlane.f32.xlu0 %v208_v41 }
 0x39f   :  { %v331_v42 = vpop.xlane.xlu1 %330 }
 0x3a0   :  { %909 = vrcp.f32 %v331_v42 }
 0x3a1   :  { %v334_v43 = vpop.xlane.xlu0 %333 }
 0x3a2   :  { %911 = vrcp.f32 %v334_v43 }
 0x3a7   :  { %v452_v57 = vpop.xlane.xlu0 %451 }
 0x3a8   :  { %913 = vrcp.f32 %v452_v57 }
 0x3aa   :  { %v910_v49 = vpop.eup %909 }
 0x3ac   :  { %v912_v51 = vpop.eup %911 }
 0x3b2   :  { %v914_v63 = vpop.eup %913 }
 0x3d6   :  { %v455_v58 = vpop.xlane.xlu1 %454 }
 0x3d7   :  { %915 = vrcp.f32 %v455_v58 }
 0x3da   :  { %v576_v59 = vpop.xlane.xlu1 %575 }
 0x3db   :  { %917 = vrcp.f32 %v576_v59 }
 0x3dc   :  { %v573_v61 = vpop.xlane.xlu0 %572 }
 0x3dd   :  { %919 = vrcp.f32 %v573_v61 }
 0x3de   :  { %v213_v17 = vpop.xlane.xlu1 %212 }
 0x3df   :  { %921 = vrcp.f32 %v213_v17 }
 0x3e0   :  { %v210_v18 = vpop.xlane.xlu0 %209 }
 0x3e1   :  { %v916_v2 = vpop.eup %915  ;;  %923 = vrcp.f32 %v210_v18 }
 0x3e4   :  { %v255_v44 = vpop.f32.mrb[4].mxu0 }
 0x3e5   :  { %v805_v45 = vpop.f32.mrb[5].mxu0  ;;  %v918_v10 = vpop.eup %917 }
 0x3e6   :  { %v258_v46 = vpop.f32.mrb[6].mxu0 }
 0x3e7   :  { %v806_v47 = vpop.f32.mrb[7].mxu0  ;;  %v920_v12 = vpop.eup %919 }
 0x3e9   :  { %v922_v20 = vpop.eup %921 }
 0x3ea   :  { %v265_v28 = vmul.f32 %v922_v20, %v258_v46 }
 0x3eb   :  { %v924_v22 = vpop.eup %923 }
 0x3ec   :  { %v376_v48 = vpop.f32.mrb[8].mxu0  ;;  %v264_v27 = vmul.f32 %v924_v22, %v255_v44 }
 0x3ed   :  { %v817_v50 = vpop.f32.mrb[9].mxu0  ;;  %v385_v53 = vmul.f32 %v910_v49, %v376_v48 }
 0x3ee   :  { %v379_v52 = vpop.f32.mrb[10].mxu0 }
 0x3ef   :  { %v386_v54 = vmul.f32 %v912_v51, %v379_v52  ;;  %v818_v55 = vpop.f32.mrb[11].mxu0 }
 0x3f1   :  { %v873_v56 = vpack.i.bf16 %v386_v54, %v385_v53 }
 0x3f3   :  { %874 = vrot.lane.b32.xlu0 %v873_v56, %s1036_s9 }
 0x41d   :  { %v497_v62 = vpop.f32.mrb[12].mxu0 }
 0x41e   :  { %v829_v1 = vpop.f32.mrb[13].mxu0  ;;  %v506_v4 = vmul.f32 %v914_v63, %v497_v62 }
 0x41f   :  { %v500_v3 = vpop.f32.mrb[14].mxu0 }
 0x420   :  { %v507_v5 = vmul.f32 %v916_v2, %v500_v3  ;;  %v830_v6 = vpop.f32.mrb[15].mxu0 }
 0x422   :  { %v878_v8 = vpack.i.bf16 %v507_v5, %v506_v4 }
 0x424   :  { %879 = vrot.lane.b32.xlu1 %v878_v8, %s1037_s22 }
 0x425   :  { %v618_v9 = vpop.f32.mrb[16].mxu0 }
 0x426   :  { %v841_v11 = vpop.f32.mrb[17].mxu0  ;;  %v627_v0 = vmul.f32 %v920_v12, %v618_v9 }
 0x427   :  { %v621_v13 = vpop.f32.mrb[18].mxu0 }
 0x428   :  { %v628_v14 = vmul.f32 %v918_v10, %v621_v13  ;;  %v842_v15 = vpop.f32.mrb[19].mxu0 }
 0x42a   :  { %v883_v16 = vpack.i.bf16 %v628_v14, %v627_v0 }
 0x42c   :  { %884 = vrot.lane.b32.xlu1 %v883_v16, %s1038_s23 }
 0x465   :  { %v875_v19 = vpop.permute.xlu0 %874 }
 0x466   :  { %v877_v23 = vunpack.i.h.bf16 %v875_v19  ;;  %v876_v24 = vunpack.i.l.bf16 %v875_v19 }
 0x468   :  { %v654_v30 = vsel %vm147_vm2, %v265_v28, %v877_v23  ;;  %v653_v31 = vsel %vm147_vm2, %v264_v27, %v876_v24 }
 0x496   :  { %v880_v21 = vpop.permute.xlu1 %879 }
 0x497   :  { %v882_v25 = vunpack.i.h.bf16 %v880_v21  ;;  %v881_v26 = vunpack.i.l.bf16 %v880_v21 }
 0x499   :  { %v656_v34 = vsel %vm195_vm3, %v654_v30, %v882_v25  ;;  %v655_v35 = vsel %vm195_vm3, %v653_v31, %v881_v26 }
 0x49e   :  { %v885_v29 = vpop.permute.xlu1 %884 }
 0x49f   :  { %v887_v32 = vunpack.i.h.bf16 %v885_v29  ;;  %v886_v33 = vunpack.i.l.bf16 %v885_v29 }
 0x4a1   :  { %v659_v36 = vsel %vm657_vm4, %v656_v34, %v887_v32  ;;  %v658_v37 = vsel %vm657_vm4, %v655_v35, %v886_v33 }
 0x4a2   :  { %v660_v38 = vpack.c.bf16 %v659_v36, %v658_v37 }
 0x4a4   :  { %848 = vmatmul.mubr.msk.bf16.vlgmr.msra.gmra.mrb[16].mxu1 %vm96_vm1, %v660_v38 }
 0x577   :  { %v721_v40 = vpop.f32.mrb[16].mxu1 }
 0x578   :  { %v722_v41 = vadd.f32 %v761_v39, %v721_v40  ;;  %v849_v42 = vpop.f32.mrb[17].mxu1 }
 0x579   :  { %v724_v43 = vpop.f32.mrb[18].mxu1 }
 0x57a   :  { %728 = vst [vmem:[#allocation8] sm:$0xff] %v722_v41  ;;  %v725_v44 = vadd.f32 %v761_v39, %v724_v43  ;;  %v850_v45 = vpop.f32.mrb[19].mxu1 }
 0x57c   :  { %729 = vst [vmem:[#allocation8 + $0x8] sm:$0xff] %v725_v44 }
 0x57d   :  { %1002 = shalt.err (!%p999_p0)
}
 0x57e   :  { %s1003_s7 = scalar_lea.hbm %s1249_s6, 256 }
 0x57f   :  { %p1004_p1 = scmp.ne.s32.totalorder %s1249_s6, %s1003_s7  ;;  %p1007_p2 = scmp.lt.u32.totalorder %s1003_s7, %s1249_s6 }
 0x581   :  { %p1009_p3 = pnand %p1007_p2, %p1004_p1 }
 0x583   :  { %1012 = shalt.err (!%p1009_p3)
}
 0x584   :  { %s1040_s10 = smov 128  }
 0x585   :  { %741 = dma.vmem_to_hbm [thread:$0]  %s736_s28, 256, %s1249_s6, [#allocation4], %s1040_s10, %s1040_s10, %s1036_s9  }
 0x586   :  { %1017 = dma.done.wait [#allocation4], 256  }
 0x587   :  { %1018 = vsyncadd [#allocation4], 4294967040 }
 0x588   :  { %745 = vsyncpa [#allocation3], 1 }
 0x589   :  { %746 = vsyncpa [#allocation6], 1 }
 0x58a   :  { %747 = vsyncpa [#allocation4], 1 }

</bundles_post_ra>
